<compile_context>
chip_gen: v7x
topology: tpu7x:2x2x1
jax: 0.10.0
libtpu: 0.0.40
codegen_flags: <defaults>
</compile_context>

<pallas_src>
import functools

import jax
import jax.numpy as jnp
from jax.experimental import pallas as pl
from jax.experimental.pallas import tpu as pltpu

DIM_QTABLE = 64


# ------------------------------ Pallas kernels ------------------------------

def _decode_film_kernel(x_ref, w_ref, b_ref, s_ref, o_ref):
    # x_ref: (1, TL, Cin)   pixel tile (channels on lanes)
    # w_ref: (Cout, Cin)    Conv2d 1x1 weight (kernel dims squeezed)
    # b_ref: (Cout, 1)      bias (f32)
    # s_ref: (1, Cout, 1)   FiLM scale = qt row of this batch element (f32)
    # o_ref: (1, Cout, TL)  lane-dense NCHW-flattened output tile
    #
    # (Cout, TL) = W @ X^T with Cin contracted on the last (lane) dim of BOTH
    # operands -- same orientation as the flash-attention q@k^T einsum, so the
    # big x tile needs no per-tile transpose and the output is written as a
    # lane-dense NCHW slab (no masked partial stores, no wrapper transpose).
    y = jax.lax.dot_general(
        w_ref[...], x_ref[0],
        dimension_numbers=(((1,), (1,)), ((), ())),   # contract Cin -> (Cout, TL)
        preferred_element_type=jnp.float32)
    o_ref[0] = ((y + b_ref[...]) * s_ref[0]).astype(o_ref.dtype)


def _decode_kernel(x_ref, w_ref, b_ref, o_ref):
    # 'none' interaction: identical minus the FiLM scale (no dummy operand).
    y = jax.lax.dot_general(
        w_ref[...], x_ref[0],
        dimension_numbers=(((1,), (1,)), ((), ())),
        preferred_element_type=jnp.float32)
    o_ref[0] = (y + b_ref[...]).astype(o_ref.dtype)


# ------------------------------ tiling helpers ------------------------------

def _pick_pixel_tile(L, target, min_tiles):
    """Largest multiple of 128 that divides L, is <= target and yields >= min_tiles
    tiles.  Returns (tile, exact); exact=False means no such divisor exists and the
    caller must pad (only when H*W is not a multiple of 128)."""
    cap = min(int(target), L)
    if min_tiles > 1:
        cap = min(cap, max(128, L // min_tiles))
    cap = max(128, (cap // 128) * 128)
    for tl in range(cap, 127, -128):
        if L % tl == 0:
            return tl, True
    return cap, False


def _vmem_limit_bytes(tile, cout):
    # The (tile, Cin) x block is lane-padded to 128 lanes in VMEM regardless of Cin;
    # budget conservatively at f32.  Double-buffered x + out tiles plus slack.
    x_tile = tile * 128 * 4
    o_tile = cout * tile * 4
    need = 2 * (x_tile + o_tile) + (1 << 20)
    # <= 48 MiB keeps a big tile safe on v7x (64 MiB physical VMEM); >= 32 MiB lifts
    # v5e's 16 MiB scoped default so large tiles don't fail to compile.
    return int(min(48 << 20, max(32 << 20, 2 * need)))


# ------------------------------ wrapper ------------------------------

def block_decoder_forward(embedding, qt, w, b, *, interaction="FiLM", tl=4096):
    """BlockDecoder.forward.

    embedding: (N, H, W, Cin)
    qt:        (N, DIM_QTABLE) (used only for 'FiLM')
    w:         (Cout, Cin) or (Cout, Cin, 1, 1)  Conv2d 1x1 weight
    b:         (Cout,)
    returns    (N, Cout, H, W) in embedding.dtype
    """
    if interaction in ("CFM", "concat"):
        # TODO(synk): 'CFM' / 'concat' raise NotImplementedError in the reference too.
        raise NotImplementedError(interaction)
    assert interaction in ("FiLM", "none")

    N, H, W, Cin = embedding.shape
    if w.ndim == 4:                                   # torch Conv2d weight layout
        w = w.reshape(w.shape[0], w.shape[1])
    Cout = w.shape[0]
    L = H * W
    out_dtype = embedding.dtype

    # Pixel tile: multiple of 128 dividing L (no pad/slice HBM passes).  Force >= 2
    # tiles when N == 1 so both v7x TensorCores get grid work.
    min_tiles = 2 if N == 1 else 1
    tile, exact = _pick_pixel_tile(L, tl, min_tiles)

    x = embedding.reshape(N, L, Cin)                  # free reshape; dtype untouched
    Lp = L
    if not exact:
        # Rare fallback (H*W not a multiple of 128): pad pixels, slice off below.
        Lp = pl.cdiv(L, tile) * tile
        x = jnp.pad(x, ((0, 0), (0, Lp - L), (0, 0)))

    b2 = b.reshape(Cout, 1).astype(jnp.float32)

    grid = (N, Lp // tile)
    x_spec = pl.BlockSpec((1, tile, Cin), lambda n, i: (n, i, 0))
    w_spec = pl.BlockSpec((Cout, Cin), lambda n, i: (0, 0))
    b_spec = pl.BlockSpec((Cout, 1), lambda n, i: (0, 0))
    o_spec = pl.BlockSpec((1, Cout, tile), lambda n, i: (n, 0, i))
    cparams = pltpu.CompilerParams(
        dimension_semantics=("parallel", "parallel"),
        vmem_limit_bytes=_vmem_limit_bytes(tile, Cout))
    out_shape = jax.ShapeDtypeStruct((N, Cout, Lp), out_dtype)

    isz = jnp.dtype(embedding.dtype).itemsize
    osz = jnp.dtype(out_dtype).itemsize
    film = interaction == "FiLM"
    cost = pl.CostEstimate(
        flops=2 * N * L * Cin * Cout + (N * L * Cout if film else 0),
        transcendentals=0,
        bytes_accessed=(N * L * Cin * isz + N * L * Cout * osz
                        + Cout * (Cin + 1) * 4 + (N * Cout * 4 if film else 0)))

    if film:
        assert qt is not None and qt.shape == (N, DIM_QTABLE) and Cout == DIM_QTABLE
        qt3 = qt.astype(jnp.float32).reshape(N, Cout, 1)   # per-batch scale column
        s_spec = pl.BlockSpec((1, Cout, 1), lambda n, i: (n, 0, 0))
        out = pl.pallas_call(
            _decode_film_kernel,
            out_shape=out_shape,
            grid_spec=pltpu.PrefetchScalarGridSpec(
                num_scalar_prefetch=0, grid=grid,
                in_specs=[x_spec, w_spec, b_spec, s_spec],
                out_specs=o_spec),
            compiler_params=cparams,
            cost_estimate=cost,
        )(x, w, b2, qt3)
    else:
        out = pl.pallas_call(
            _decode_kernel,
            out_shape=out_shape,
            grid_spec=pltpu.PrefetchScalarGridSpec(
                num_scalar_prefetch=0, grid=grid,
                in_specs=[x_spec, w_spec, b_spec],
                out_specs=o_spec),
            compiler_params=cparams,
            cost_estimate=cost,
        )(x, w, b2)

    if Lp != L:
        out = out[:, :, :L]   # padded tail (garbage) dropped -- fallback path only
    return out.reshape(N, Cout, H, W)


# ------------------------------ reference (pure JAX) ------------------------------

def _reference(embedding, qt, w, b, interaction):
    x = jnp.transpose(embedding, (0, 3, 1, 2))                        # NHWC -> NCHW
    y = jnp.einsum("oc,nchw->nohw", w, x) + b[None, :, None, None]    # 1x1 conv
    if interaction == "FiLM":
        y = y * qt[:, :, None, None]
    return y


# ------------------------------ demo ------------------------------

if __name__ == "__main__":
    def run_case(N, H, W, Cin, interaction, key):
        Cout = DIM_QTABLE
        ke, kq, kw, kb = jax.random.split(key, 4)
        embedding = jax.random.normal(ke, (N, H, W, Cin), dtype=jnp.float32)
        qt = jax.random.uniform(kq, (N, DIM_QTABLE), minval=0.5, maxval=2.0,
                                dtype=jnp.float32)
        lim = 1.0 / (Cin ** 0.5)                      # Conv2d default-ish uniform init
        w = jax.random.uniform(kw, (Cout, Cin), minval=-lim, maxval=lim,
                               dtype=jnp.float32)
        b = jax.random.uniform(kb, (Cout,), minval=-lim, maxval=lim,
                               dtype=jnp.float32)

        fwd = jax.jit(functools.partial(block_decoder_forward, interaction=interaction))
        out = fwd(embedding, qt, w, b)
        jax.block_until_ready(out)

        ref = _reference(embedding, qt, w, b, interaction)
        assert out.shape == (N, Cout, H, W)
        assert bool(jnp.all(jnp.isfinite(out)))
        assert bool(jnp.allclose(out, ref, rtol=1e-4, atol=1e-4)), interaction

    key = jax.random.PRNGKey(0)
    k1, k2, k3 = jax.random.split(key, 3)
    run_case(2, 16, 16, 32, "FiLM", k1)   # exact-divisor tile (L=256 -> tl=256), FiLM
    run_case(2, 16, 16, 32, "none", k2)   # plain 1x1 conv variant
    run_case(1, 10, 10, 32, "FiLM", k3)   # ragged L (pad fallback) + N==1 path

    print("KERNEL_OK")
</pallas_src>

<mosaic_0001>
module attributes {stable_mosaic.version = 11 : i64} {
  func.func @_decode_film_kernel(%arg0: i32, %arg1: i32, %arg2: memref<1x256x32xf32, #tpu.memory_space<vmem>>, %arg3: memref<64x32xf32, #tpu.memory_space<vmem>>, %arg4: memref<64x1xf32, #tpu.memory_space<vmem>>, %arg5: memref<1x64x1xf32, #tpu.memory_space<vmem>>, %arg6: memref<1x64x256xf32, #tpu.memory_space<vmem>>) attributes {dimension_semantics = [#tpu.dimension_semantics<parallel>, #tpu.dimension_semantics<parallel>], iteration_bounds = array<i64: 2, 1>, scalar_prefetch = 0 : i64, scratch_operands = 0 : i64, tpu.core_type = #tpu.core_type<tc>, window_params = [{transform_indices = @transform_0, window_bounds = array<i64: 1, 256, 32>}, {pipeline_mode = #tpu.pipeline_mode<synchronous>, transform_indices = @transform_1, window_bounds = array<i64: 64, 32>}, {pipeline_mode = #tpu.pipeline_mode<synchronous>, transform_indices = @transform_2, window_bounds = array<i64: 64, 1>}, {transform_indices = @transform_3, window_bounds = array<i64: 1, 64, 1>}, {transform_indices = @transform_4, window_bounds = array<i64: 1, 64, 256>}]} {
    %c0 = arith.constant 0 : index
    %c0_0 = arith.constant 0 : index
    %0 = vector.load %arg3[%c0, %c0_0] : memref<64x32xf32, #tpu.memory_space<vmem>>, vector<64x32xf32>
    %c0_1 = arith.constant 0 : index
    %c0_2 = arith.constant 0 : index
    %c0_3 = arith.constant 0 : index
    %1 = vector.load %arg2[%c0_1, %c0_2, %c0_3] : memref<1x256x32xf32, #tpu.memory_space<vmem>>, vector<1x256x32xf32>
    %2 = vector.shape_cast %1 : vector<1x256x32xf32> to vector<256x32xf32>
    %cst = arith.constant dense<0.000000e+00> : vector<64x256xf32>
    %3 = tpu.matmul %0, %2, %cst {dimension_numbers = #tpu.dot_dimension_numbers<[1], [1], [0], [0], [0, 0, 1, 0], [], []>} : vector<64x32xf32>, vector<256x32xf32>, vector<64x256xf32> -> vector<64x256xf32>
    %c0_4 = arith.constant 0 : index
    %c0_5 = arith.constant 0 : index
    %4 = vector.load %arg4[%c0_4, %c0_5] : memref<64x1xf32, #tpu.memory_space<vmem>>, vector<64x1xf32>
    %5 = vector.broadcast %4 : vector<64x1xf32> to vector<64x256xf32>
    %6 = arith.addf %3, %5 : vector<64x256xf32>
    %c0_6 = arith.constant 0 : index
    %c0_7 = arith.constant 0 : index
    %c0_8 = arith.constant 0 : index
    %7 = vector.load %arg5[%c0_6, %c0_7, %c0_8] : memref<1x64x1xf32, #tpu.memory_space<vmem>>, vector<1x64x1xf32>
    %8 = vector.shape_cast %7 : vector<1x64x1xf32> to vector<64x1xf32>
    %9 = vector.broadcast %8 : vector<64x1xf32> to vector<64x256xf32>
    %10 = arith.mulf %6, %9 : vector<64x256xf32>
    %c0_9 = arith.constant 0 : index
    %c0_10 = arith.constant 0 : index
    %c0_11 = arith.constant 0 : index
    %11 = vector.load %arg6[%c0_9, %c0_10, %c0_11] : memref<1x64x256xf32, #tpu.memory_space<vmem>>, vector<1x64x256xf32>
    %12 = vector.shape_cast %11 : vector<1x64x256xf32> to vector<64x256xf32>
    %13 = vector.shape_cast %10 : vector<64x256xf32> to vector<1x64x256xf32>
    tpu.vector_store %arg6[%c0_9, %c0_10, %c0_11], %13 {strides = array<i32>} : memref<1x64x256xf32, #tpu.memory_space<vmem>>, vector<1x64x256xf32>,
    return
  }
  func.func @transform_0(%arg0: i32, %arg1: i32) -> (i32, i32, i32) {
    %c0_i32 = arith.constant 0 : i32
    %c0_i32_0 = arith.constant 0 : i32
    return %arg0, %arg1, %c0_i32 : i32, i32, i32
  }
  func.func @transform_1(%arg0: i32, %arg1: i32) -> (i32, i32) {
    %c0_i32 = arith.constant 0 : i32
    %c0_i32_0 = arith.constant 0 : i32
    %c0_i32_1 = arith.constant 0 : i32
    return %c0_i32, %c0_i32_0 : i32, i32
  }
  func.func @transform_2(%arg0: i32, %arg1: i32) -> (i32, i32) {
    %c0_i32 = arith.constant 0 : i32
    %c0_i32_0 = arith.constant 0 : i32
    %c0_i32_1 = arith.constant 0 : i32
    return %c0_i32, %c0_i32_0 : i32, i32
  }
  func.func @transform_3(%arg0: i32, %arg1: i32) -> (i32, i32, i32) {
    %c0_i32 = arith.constant 0 : i32
    %c0_i32_0 = arith.constant 0 : i32
    %c0_i32_1 = arith.constant 0 : i32
    return %arg0, %c0_i32, %c0_i32_0 : i32, i32, i32
  }
  func.func @transform_4(%arg0: i32, %arg1: i32) -> (i32, i32, i32) {
    %c0_i32 = arith.constant 0 : i32
    %c0_i32_0 = arith.constant 0 : i32
    return %arg0, %c0_i32, %arg1 : i32, i32, i32
  }
}

</mosaic_0001>

<bundles_post_ra>
// kernel: block_decoder_forward.1
= control target key start
LH: loop header
LB: loop body
LE: loop exit
PB: predicated region body
PF: predicated region fallthrough
CT: control target
= control target key end

     0   :  { %9 = vsyncpa [#allocation3], 0  ;;  %s1463_s0 = inlined_call_operand.hbm [shape: f32[2,256,32], index: 0, kind: input, shape index: {}]   ;;  %s1464_s1 = inlined_call_operand.vmem [shape: f32[64,32], index: 1, kind: input, shape index: {}]   ;;  %s1465_s2 = inlined_call_operand.vmem [shape: f32[64,1], index: 2, kind: input, shape index: {}]   ;;  %s1466_s3 = inlined_call_operand.vmem [shape: f32[2,64,1], index: 3, kind: input, shape index: {}]   ;;  %s1467_s4 = inlined_call_operand.vmem [shape: f32[2,64,256], index: 4, kind: output, shape index: {}]  }
   0x1   :  { %11 = vsyncpa [#allocation3 + $0x1], 0  ;;  %s1116_s15 = smov 0   ;;  %s1118_s16 = smov 0  }
   0x2   :  { %s1120_s17 = smov 0   ;;  %s1122_s18 = smov 0  }
   0x3   :  { %s1124_s19 = smov 0   ;;  %s1126_s20 = smov 0  }
   0x4 LB: > { %s775_s21 = sadd.s32 4294967295, %s1085_s20   ;;  %s29_s22 = sadd.s32 1, %s1081_s19  ;;  %s1085_s20 = sphi %s1126_s20, %s17_s20   ;;  %s1081_s19 = sphi %s1124_s19, %s1477_s19   ;;  %s1077_s18 = sphi %s1122_s18, %s1476_s18   ;;  %s1073_s17 = sphi %s1120_s17, %s1475_s17   ;;  %s1069_s16 = sphi %s1118_s16, %s1474_s16   ;;  %s1065_s15 = sphi %s1116_s15, %s1473_s15  }
   0x5   : > { %p31_p0 = scmp.ge.s32.totalorder %s29_s22, 2  ;;  %s38_s23 = sadd.s32 1, %s1073_s17 }
   0x6   : > { %p45_p1 = scmp.ne.s32.totalorder %s1073_s17, %s1069_s16  ;;  %p46_p2 = scmp.eq.s32.totalorder %s1085_s20, 0 }
   0x7   : > { %s1479_s22 = smov (%p31_p0, %s29_s22), 0  ;;  %p51_p4 = scmp.ne.s32.totalorder %s1069_s16, %s1065_s15 }
   0x8   : > { %p1152_p3 = por %p46_p2, %p45_p1  ;;  %s33_s25 = ssub.s32 %s1081_s19, %s1479_s22 }
   0x9   : > { %p52_p5 = scmp.eq.s32.totalorder %s775_s21, 0  ;;  %p36_p6 = scmp.eq.s32.totalorder %s33_s25, 0 }
   0xa   : > { %p951_p8 = scmp.lt.s32.totalorder %s1085_s20, 2  ;;  %s177_s28 = sand.u32 1, %s1073_s17  }
   0xb   : > { %p1159_p7 = por %p52_p5, %p51_p4  ;;  %s830_s29 = sshll.u32 %s1081_s19, 12 }
   0xc   : > { %s1165_s27 = scalar_select %p36_p6, %s1073_s17, %s38_s23  }
   0xd   : > { %s779_s30 = sshll.u32 %s177_s28, 8  ;;  %s1172_s7 = scalar_lea.hbm %s1463_s0, %s830_s29 }
   0xe   : > { %s181_s8 = scalar_lea.vmem [#allocation2], %s779_s30  ;;  %p1176_p9 = pnand %p951_p8, %p1152_p3 }
   0xf   : > { %s190_s9 = sshll.u32 %s181_s8, 4  ;;  %s1182_s11 = scalar_lea.sflag [#allocation3], %s177_s28  ;;  %s1180_s9 = int_to_ptr.vmem [resolvable:$true] %s190_s9 }
  0x10   : > { %s1005_s12 = scalar_lea.hbm %s1172_s7, 4096  ;;  %p1007_p11 = pneg %p1176_p9 }
  0x11   : > { %p1006_p10 = scmp.ne.s32.totalorder %s1172_s7, %s1005_s12  ;;  %s1010_s15 = scalar_lea.hbm %s1463_s0, 8192 }
  0x12   : > { %p1011_p0 = scmp.lt.u32.totalorder %s1172_s7, %s1463_s0  ;;  %p1012_p1 = scmp.lt.u32.totalorder %s1010_s15, %s1005_s12 }
  0x13   : > { %p1008_p12 = pnand %p1007_p11, %p1006_p10  ;;  %p1014_p3 = scmp.lt.u32.totalorder %s1005_s12, %s1172_s7 }
  0x14   : > { %p1013_p2 = por %p1012_p1, %p1011_p0 }
  0x15   : > { %p1009_p13 = pneg %p1008_p12 }
  0x16   : > { %p1015_p4 = por %p1014_p3, %p1013_p2 }
  0x18   : > { %p1016_p5 = pnand %p1015_p4, %p1009_p13 }
  0x1a   : > { %1019 = shalt.err (!%p1016_p5)
}
  0x1b   : > { %s1020_s24 = scalar_lea.vmem %s1180_s9, 4096  ;;  %s1087_s25 = smov [#allocation2]  }
  0x1c   : > { %p1021_p6 = scmp.ne.s32.totalorder %s1180_s9, %s1020_s24  ;;  %s1025_s28 = sshll.u32 %s1087_s25, 4  ;;  %s1026_s28 = int_to_ptr.vmem [resolvable:$false] %s1025_s28 }
  0x1d   : > { %s1027_s29 = scalar_lea.vmem %s1026_s28, 8192  ;;  %p1028_p12 = scmp.lt.s32.totalorder %s1180_s9, %s1026_s28 }
  0x1e   : > { %p1023_p8 = pnand %p1021_p6, %p1007_p11  ;;  %p1029_p0 = scmp.lt.s32.totalorder %s1027_s29, %s1020_s24 }
  0x20   : > { %p1024_p10 = pneg %p1023_p8  ;;  %p1030_p1 = por %p1029_p0, %p1028_p12 }
  0x22   : > { %p1031_p2 = pnand %p1030_p1, %p1024_p10 }
  0x24   : > { %1034 = shalt.err (!%p1031_p2)
}
  0x25   : > { %s1088_s30 = smov 128   ;;  %s1089_s5 = smov 8  }
  0x26   : > { %950 = dma.hbm_to_vmem [thread:$0]  (!%p1176_p9), %s1172_s7, 4096, %s1180_s9, %s1182_s11, %s1088_s30, %s1088_s30, %s1089_s5  }
  0x27   : > { %p782_p11 = scmp.ge.s32.totalorder %s1085_s20, 1  ;;  %p206_p13 = scmp.lt.s32.totalorder %s1085_s20, 3 }
  0x29   : > { %p207_p3 = pnand %p782_p11, %p206_p13 }
  0x2a   : > { %s212_s6 = sand.u32 (!%p207_p3), 1, %s1069_s16  }
  0x2b   : > { %210 = sbr.rel (%p207_p3) target bundleno = 348 (0x15c), region = 36  ;;  %s783_s8 = sshll.u32 (!%p207_p3), %s212_s6, 8 }
  0x2c   : > { %s213_s12 = scalar_lea.sflag (!%p207_p3), [#allocation3], %s212_s6  ;;  %s1213_s13 = scalar_lea.vmem (!%p207_p3), [#allocation2], %s783_s8 }
  0x32   : > { %1060 = dma.done.wait (%p1159_p7), %s213_s12, 4096  }
  0x33   : > { %1062 = vsyncadd (%p1159_p7), %s213_s12, 4294963200  ;;  %v1090_v0 = vmov 0   ;;  %vm354_vm0 = vcmask 261120   ;;  %v290_v2 = vld [vmem:[%s1213_s13 + $0x80] sm:$0xff]  ;;  %v291_v3 = vld [vmem:[%s1213_s13 + $0x88] sm:$0xff]  ;;  %p251_p7 = scmp.lt.s32.totalorder %s1077_s18, 1 }
  0x34   : > { %1004 = vset.pattern.permute.xlu1 %v1090_v0  ;;  %1003 = vset.pattern.permute.xlu0 %v1090_v0  ;;  %vm1221_vm1 = vmpackc.low %vm354_vm0, %vm354_vm0  ;;  %v274_v4 = vld [vmem:[%s1213_s13] sm:$0xff]  ;;  %v881_v5 = vpack.c.bf16 %v291_v3, %v290_v2  ;;  %v275_v6 = vld [vmem:[%s1213_s13 + $0x8] sm:$0xff] }
  0x35   : > { %v292_v7 = vld [vmem:[%s1213_s13 + $0x90] sm:$0xff]  ;;  %v293_v8 = vld [vmem:[%s1213_s13 + $0x98] sm:$0xff]  ;;  %v884_v9 = vpack.c.bf16 %v275_v6, %v274_v4  ;;  %v294_v13 = vld [vmem:[%s1213_s13 + $0xa0] sm:$0xff]  ;;  %s1481_s18 = smov (!%p251_p7, %s1077_s18), 1 }
  0x36   : > { %v887_v10 = vpack.c.bf16 %v293_v8, %v292_v7  ;;  %883 = vmatprep.subr.msk.bf16.mxu0 %vm1221_vm1, %v881_v5  ;;  %929 = vmatprep.subr.msk.bf16.mxu1 %vm1221_vm1, %v881_v5  ;;  %v276_v11 = vld [vmem:[%s1213_s13 + $0x10] sm:$0xff]  ;;  %v277_v12 = vld [vmem:[%s1213_s13 + $0x18] sm:$0xff]  ;;  %v295_v14 = vld [vmem:[%s1213_s13 + $0xa8] sm:$0xff]  ;;  %s831_s8 = sshll.u32 %s1481_s18, 6  ;;  %s832_s12 = sshll.u32 %s1481_s18, 7 }
  0x37   : > { %886 = vmatpush3.bf16.xpose.msk.msra.mxu0 %vm1221_vm1, %v884_v9  ;;  %937 = vmatpush3.bf16.xpose.msk.msra.mxu1 %vm1221_vm1, %v884_v9  ;;  %v890_v15 = vpack.c.bf16 %v277_v12, %v276_v11  ;;  %v893_v16 = vpack.c.bf16 %v295_v14, %v294_v13  ;;  %v1250_v17 = vld [vmem:[%s1464_s1] sm:$0xff]  ;;  %v279_v20 = vld [vmem:[%s1213_s13 + $0x28] sm:$0xff]  ;;  %v308_v21 = vld [vmem:[%s1465_s2 + $0x10] sm:$0xff]  ;;  %s1317_s14 = scalar_lea.vmem %s1466_s3, %s831_s8  ;;  %s1421_s9 = scalar_lea.vmem %s1467_s4, %s832_s12 }
  0x38   : > { %889 = vmatprep.subr.msk.bf16.mxu0 %vm1221_vm1, %v887_v10  ;;  %930 = vmatprep.subr.msk.bf16.mxu1 %vm1221_vm1, %v887_v10  ;;  %v1257_v18 = vld [vmem:[%s1464_s1 + $0x20] sm:$0xff]  ;;  %v296_v23 = vld [vmem:[%s1213_s13 + $0xb0] sm:$0xff]  ;;  %v297_v24 = vld [vmem:[%s1213_s13 + $0xb8] sm:$0xff] }
  0x39   : > { %865 = vmatprep.mubr.msk.f32.mxu0 %vm354_vm0, %v1250_v17  ;;  %v278_v19 = vld [vmem:[%s1213_s13 + $0x20] sm:$0xff]  ;;  %873 = vmatprep.mubr.msk.f32.mxu1 %vm354_vm0, %v1257_v18  ;;  %v309_v25 = vld [vmem:[%s1465_s2 + $0x18] sm:$0xff]  ;;  %v307_v27 = vld [vmem:[%s1465_s2 + $0x8] sm:$0xff]  ;;  %v899_v28 = vpack.c.bf16 %v297_v24, %v296_v23 }
  0x3a   : > { %v306_v22 = vld [vmem:[%s1465_s2] sm:$0xff]  ;;  %326 = vperm.xlu1 %1004, %v308_v21   ;;  %v896_v26 = vpack.c.bf16 %v279_v20, %v278_v19  ;;  %v311_v29 = vld [vmem:[%s1465_s2 + $0x28] sm:$0xff]  ;;  %v280_v31 = vld [vmem:[%s1213_s13 + $0x30] sm:$0xff] }
  0x3b   : > { %316 = vperm.xlu0 %1003, %v306_v22   ;;  %v310_v30 = vld [vmem:[%s1465_s2 + $0x20] sm:$0xff]  ;;  %v281_v32 = vld [vmem:[%s1213_s13 + $0x38] sm:$0xff]  ;;  %v299_v34 = vld [vmem:[%s1213_s13 + $0xc8] sm:$0xff] }
  0x3c   : > { %v298_v33 = vld [vmem:[%s1213_s13 + $0xc0] sm:$0xff]  ;;  %v313_v35 = vld [vmem:[%s1465_s2 + $0x38] sm:$0xff]  ;;  %v902_v36 = vpack.c.bf16 %v281_v32, %v280_v31  ;;  %v312_v37 = vld [vmem:[%s1465_s2 + $0x30] sm:$0xff] }
  0x3d   : > { %v905_v38 = vpack.c.bf16 %v299_v34, %v298_v33  ;;  %v589_v39 = vld [vmem:[%s1317_s14 + $0x8] sm:$0xff]  ;;  %v588_v40 = vld [vmem:[%s1317_s14] sm:$0xff]  ;;  %v300_v43 = vld [vmem:[%s1213_s13 + $0xd0] sm:$0xff] }
  0x3e   : > { %331 = vperm.xlu1 %1004, %v309_v25   ;;  %v282_v41 = vld [vmem:[%s1213_s13 + $0x40] sm:$0xff]  ;;  %v283_v42 = vld [vmem:[%s1213_s13 + $0x48] sm:$0xff]  ;;  %v301_v44 = vld [vmem:[%s1213_s13 + $0xd8] sm:$0xff] }
  0x3f   : > { %892 = vmatpush3.bf16.xpose.msk.msra.mxu0 %vm1221_vm1, %v890_v15  ;;  %938 = vmatpush3.bf16.xpose.msk.msra.mxu1 %vm1221_vm1, %v890_v15  ;;  %v591_v45 = vld [vmem:[%s1317_s14 + $0x18] sm:$0xff]  ;;  %v908_v46 = vpack.c.bf16 %v283_v42, %v282_v41  ;;  %v590_v47 = vld [vmem:[%s1317_s14 + $0x10] sm:$0xff]  ;;  %v911_v48 = vpack.c.bf16 %v301_v44, %v300_v43  ;;  %v593_v49 = vld [vmem:[%s1317_s14 + $0x28] sm:$0xff] }
  0x40   : > { %895 = vmatprep.subr.msk.bf16.mxu0 %vm1221_vm1, %v893_v16  ;;  %931 = vmatprep.subr.msk.bf16.mxu1 %vm1221_vm1, %v893_v16  ;;  %v592_v50 = vld [vmem:[%s1317_s14 + $0x20] sm:$0xff]  ;;  %v284_v51 = vld [vmem:[%s1213_s13 + $0x50] sm:$0xff]  ;;  %v285_v52 = vld [vmem:[%s1213_s13 + $0x58] sm:$0xff] }
  0x41   : > { %321 = vperm.xlu0 %1003, %v307_v27   ;;  %v302_v53 = vld [vmem:[%s1213_s13 + $0xe0] sm:$0xff]  ;;  %v303_v54 = vld [vmem:[%s1213_s13 + $0xe8] sm:$0xff]  ;;  %v595_v55 = vld [vmem:[%s1317_s14 + $0x38] sm:$0xff]  ;;  %v914_v56 = vpack.c.bf16 %v285_v52, %v284_v51 }
  0x42   : > { %341 = vperm.xlu1 %1004, %v311_v29   ;;  %v594_v57 = vld [vmem:[%s1317_s14 + $0x30] sm:$0xff]  ;;  %v917_v58 = vpack.c.bf16 %v303_v54, %v302_v53  ;;  %v286_v59 = vld [vmem:[%s1213_s13 + $0x60] sm:$0xff]  ;;  %v287_v60 = vld [vmem:[%s1213_s13 + $0x68] sm:$0xff] }
  0x43   : > { %v304_v61 = vld [vmem:[%s1213_s13 + $0xf0] sm:$0xff]  ;;  %v305_v62 = vld [vmem:[%s1213_s13 + $0xf8] sm:$0xff]  ;;  %v920_v63 = vpack.c.bf16 %v287_v60, %v286_v59  ;;  %v267_v5 = vld [vmem:[%s1464_s1 + $0x8] sm:$0xff] }
  0x44   : > { %v923_v0 = vpack.c.bf16 %v305_v62, %v304_v61  ;;  %v288_v2 = vld [vmem:[%s1213_s13 + $0x70] sm:$0xff]  ;;  %v289_v3 = vld [vmem:[%s1213_s13 + $0x78] sm:$0xff]  ;;  %v271_v6 = vld [vmem:[%s1464_s1 + $0x28] sm:$0xff] }
  0x45   : > { %336 = vperm.xlu0 %1003, %v310_v30   ;;  %v926_v4 = vpack.c.bf16 %v289_v3, %v288_v2  ;;  %v268_v1 = vld [vmem:[%s1464_s1 + $0x10] sm:$0xff]  ;;  %v269_v8 = vld [vmem:[%s1464_s1 + $0x18] sm:$0xff] }
  0x46   : > { %351 = vperm.xlu1 %1004, %v313_v35   ;;  %v272_v7 = vld [vmem:[%s1464_s1 + $0x30] sm:$0xff]  ;;  %v273_v9 = vld [vmem:[%s1464_s1 + $0x38] sm:$0xff] }
  0x47   : > { %898 = vmatpush3.bf16.xpose.msk.msra.mxu0 %vm1221_vm1, %v896_v26  ;;  %939 = vmatpush3.bf16.xpose.msk.msra.mxu1 %vm1221_vm1, %v896_v26 }
  0x48   : > { %901 = vmatprep.subr.msk.bf16.mxu0 %vm1221_vm1, %v899_v28  ;;  %932 = vmatprep.subr.msk.bf16.mxu1 %vm1221_vm1, %v899_v28 }
  0x49   : > { %346 = vperm.xlu0 %1003, %v312_v37  }
  0x4a   : > { %603 = vperm.xlu1 %1004, %v589_v39  }
  0x4d   : > { %598 = vperm.xlu0 %1003, %v588_v40  }
  0x4e   : > { %613 = vperm.xlu1 %1004, %v591_v45  }
  0x4f   : > { %904 = vmatpush3.bf16.xpose.msk.msra.mxu0 %vm1221_vm1, %v902_v36  ;;  %940 = vmatpush3.bf16.xpose.msk.msra.mxu1 %vm1221_vm1, %v902_v36 }
  0x50   : > { %907 = vmatprep.subr.msk.bf16.mxu0 %vm1221_vm1, %v905_v38  ;;  %933 = vmatprep.subr.msk.bf16.mxu1 %vm1221_vm1, %v905_v38 }
  0x51   : > { %608 = vperm.xlu0 %1003, %v590_v47  }
  0x52   : > { %623 = vperm.xlu1 %1004, %v593_v49  }
  0x55   : > { %618 = vperm.xlu0 %1003, %v592_v50  }
  0x56   : > { %633 = vperm.xlu1 %1004, %v595_v55  }
  0x57   : > { %910 = vmatpush3.bf16.xpose.msk.msra.mxu0 %vm1221_vm1, %v908_v46  ;;  %941 = vmatpush3.bf16.xpose.msk.msra.mxu1 %vm1221_vm1, %v908_v46 }
  0x58   : > { %913 = vmatprep.subr.msk.bf16.mxu0 %vm1221_vm1, %v911_v48  ;;  %934 = vmatprep.subr.msk.bf16.mxu1 %vm1221_vm1, %v911_v48 }
  0x59   : > { %628 = vperm.xlu0 %1003, %v594_v57  }
  0x5f   : > { %916 = vmatpush3.bf16.xpose.msk.msra.mxu0 %vm1221_vm1, %v914_v56  ;;  %942 = vmatpush3.bf16.xpose.msk.msra.mxu1 %vm1221_vm1, %v914_v56 }
  0x60   : > { %919 = vmatprep.subr.msk.bf16.mxu0 %vm1221_vm1, %v917_v58  ;;  %935 = vmatprep.subr.msk.bf16.mxu1 %vm1221_vm1, %v917_v58 }
  0x67   : > { %922 = vmatpush3.bf16.xpose.msk.msra.mxu0 %vm1221_vm1, %v920_v63  ;;  %943 = vmatpush3.bf16.xpose.msk.msra.mxu1 %vm1221_vm1, %v920_v63 }
  0x68   : > { %925 = vmatprep.subr.msk.bf16.mxu0 %vm1221_vm1, %v923_v0  ;;  %936 = vmatprep.subr.msk.bf16.mxu1 %vm1221_vm1, %v923_v0 }
  0x6f   : > { %928 = vmatpush3.bf16.xpose.msk.msra.mxu0 %vm1221_vm1, %v926_v4  ;;  %944 = vmatpush3.bf16.xpose.msk.msra.mxu1 %vm1221_vm1, %v926_v4 }
  0x76   : > { %866 = vmatmul.mubr.msk.f32.vlgmr.msra.gmra.mrb[0].mxu0 %vm354_vm0, %v1250_v17  ;;  %874 = vmatmul.mubr.msk.f32.vlgmr.msra.gmra.mrb[0].mxu1 %vm354_vm0, %v1257_v18 }
  0x77   : > { %867 = vmatprep.mubr.msk.f32.mxu0 %vm354_vm0, %v267_v5  ;;  %875 = vmatprep.mubr.msk.f32.mxu1 %vm354_vm0, %v271_v6 }
  0x7a   : > { %868 = vmatmul.mubr.msk.f32.gmra.mrb[2].mxu0 %vm354_vm0, %v267_v5  ;;  %876 = vmatmul.mubr.msk.f32.gmra.mrb[2].mxu1 %vm354_vm0, %v271_v6 }
  0x7b   : > { %869 = vmatprep.mubr.msk.f32.mxu0 %vm354_vm0, %v268_v1  ;;  %877 = vmatprep.mubr.msk.f32.mxu1 %vm354_vm0, %v272_v7 }
  0x7e   : > { %870 = vmatmul.mubr.msk.f32.gmra.mrb[4].mxu0 %vm354_vm0, %v268_v1  ;;  %878 = vmatmul.mubr.msk.f32.gmra.mrb[4].mxu1 %vm354_vm0, %v272_v7 }
  0x7f   : > { %871 = vmatprep.mubr.msk.f32.mxu0 %vm354_vm0, %v269_v8  ;;  %879 = vmatprep.mubr.msk.f32.mxu1 %vm354_vm0, %v273_v9 }
  0x82   : > { %872 = vmatmul.mubr.msk.f32.gmra.mrb[6].mxu0 %vm354_vm0, %v269_v8  ;;  %880 = vmatmul.mubr.msk.f32.gmra.mrb[6].mxu1 %vm354_vm0, %v273_v9 }
  0xb9   : > { %v327_v11 = vpop.permute.xlu1 %326 }
  0xba   : > { %v317_v10 = vpop.permute.xlu0 %316 }
  0xbd   : > { %v1411_v13 = vpop.permute.xlu1 %331 }
  0xc0   : > { %v322_v12 = vpop.permute.xlu0 %321 }
  0xc1   : > { %v342_v15 = vpop.permute.xlu1 %341 }
  0xc4   : > { %v337_v14 = vpop.permute.xlu0 %336 }
  0xc5   : > { %v1413_v17 = vpop.permute.xlu1 %351 }
  0xc8   : > { %v347_v16 = vpop.permute.xlu0 %346 }
  0xc9   : > { %v604_v19 = vpop.permute.xlu1 %603 }
  0xcc   : > { %v599_v18 = vpop.permute.xlu0 %598 }
  0xcd   : > { %v1416_v21 = vpop.permute.xlu1 %613 }
  0xd0   : > { %v609_v20 = vpop.permute.xlu0 %608 }
  0xd1   : > { %v624_v41 = vpop.permute.xlu1 %623 }
  0xd4   : > { %v619_v28 = vpop.permute.xlu0 %618 }
  0xd5   : > { %v634_v4 = vpop.permute.xlu1 %633 }
  0xd8   : > { %v629_v54 = vpop.permute.xlu0 %628 }
 0x149   : > { %v541_v22 = vpop.f32.mrb[0].mxu0  ;;  %v565_v23 = vpop.f32.mrb[0].mxu1 }
 0x14a   : > { %v542_v24 = vadd.f32 %v541_v22, %v317_v10  ;;  %v566_v25 = vadd.f32 %v565_v23, %v337_v14  ;;  %v543_v26 = vpop.f32.mrb[1].mxu0  ;;  %v567_v27 = vpop.f32.mrb[1].mxu1 }
 0x14b   : > { %v544_v29 = vadd.f32 %v543_v26, %v317_v10  ;;  %v568_v30 = vadd.f32 %v567_v27, %v337_v14 }
 0x14c   : > { %v636_v31 = vmul.f32 %v599_v18, %v542_v24  ;;  %v644_v32 = vmul.f32 %v619_v28, %v566_v25 }
 0x14d   : > { %v637_v33 = vmul.f32 %v599_v18, %v544_v29  ;;  %v645_v34 = vmul.f32 %v619_v28, %v568_v30  ;;  %v547_v35 = vpop.f32.mrb[2].mxu0  ;;  %v571_v36 = vpop.f32.mrb[2].mxu1 }
 0x14e   : > { %652 = vst [vmem:[%s1421_s9] sm:$0xff] %v636_v31  ;;  %660 = vst [vmem:[%s1421_s9 + $0x40] sm:$0xff] %v644_v32  ;;  %v548_v37 = vadd.f32 %v547_v35, %v322_v12  ;;  %v572_v38 = vadd.f32 %v571_v36, %v342_v15  ;;  %v549_v39 = vpop.f32.mrb[3].mxu0  ;;  %v573_v40 = vpop.f32.mrb[3].mxu1 }
 0x14f   : > { %653 = vst [vmem:[%s1421_s9 + $0x8] sm:$0xff] %v637_v33  ;;  %661 = vst [vmem:[%s1421_s9 + $0x48] sm:$0xff] %v645_v34  ;;  %v550_v42 = vadd.f32 %v549_v39, %v322_v12  ;;  %v574_v43 = vadd.f32 %v573_v40, %v342_v15 }
 0x150   : > { %v638_v44 = vmul.f32 %v604_v19, %v548_v37  ;;  %v646_v45 = vmul.f32 %v624_v41, %v572_v38 }
 0x151   : > { %v639_v46 = vmul.f32 %v604_v19, %v550_v42  ;;  %v647_v47 = vmul.f32 %v624_v41, %v574_v43  ;;  %v553_v48 = vpop.f32.mrb[4].mxu0  ;;  %v577_v49 = vpop.f32.mrb[4].mxu1 }
 0x152   : > { %654 = vst [vmem:[%s1421_s9 + $0x10] sm:$0xff] %v638_v44  ;;  %662 = vst [vmem:[%s1421_s9 + $0x50] sm:$0xff] %v646_v45  ;;  %v554_v50 = vadd.f32 %v553_v48, %v327_v11  ;;  %v578_v51 = vadd.f32 %v577_v49, %v347_v16  ;;  %v555_v52 = vpop.f32.mrb[5].mxu0  ;;  %v579_v53 = vpop.f32.mrb[5].mxu1 }
 0x153   : > { %655 = vst [vmem:[%s1421_s9 + $0x18] sm:$0xff] %v639_v46  ;;  %663 = vst [vmem:[%s1421_s9 + $0x58] sm:$0xff] %v647_v47  ;;  %v556_v55 = vadd.f32 %v555_v52, %v327_v11  ;;  %v580_v56 = vadd.f32 %v579_v53, %v347_v16 }
 0x154   : > { %v640_v57 = vmul.f32 %v609_v20, %v554_v50  ;;  %v648_v58 = vmul.f32 %v629_v54, %v578_v51 }
 0x155   : > { %v641_v59 = vmul.f32 %v609_v20, %v556_v55  ;;  %v649_v60 = vmul.f32 %v629_v54, %v580_v56  ;;  %v559_v61 = vpop.f32.mrb[6].mxu0  ;;  %v583_v62 = vpop.f32.mrb[6].mxu1 }
 0x156   : > { %656 = vst [vmem:[%s1421_s9 + $0x20] sm:$0xff] %v640_v57  ;;  %664 = vst [vmem:[%s1421_s9 + $0x60] sm:$0xff] %v648_v58  ;;  %v560_v63 = vadd.f32 %v559_v61, %v1411_v13  ;;  %v584_v0 = vadd.f32 %v583_v62, %v1413_v17  ;;  %v561_v2 = vpop.f32.mrb[7].mxu0  ;;  %v585_v3 = vpop.f32.mrb[7].mxu1 }
 0x157   : > { %657 = vst [vmem:[%s1421_s9 + $0x28] sm:$0xff] %v641_v59  ;;  %665 = vst [vmem:[%s1421_s9 + $0x68] sm:$0xff] %v649_v60  ;;  %v562_v5 = vadd.f32 %v561_v2, %v1411_v13  ;;  %v586_v6 = vadd.f32 %v585_v3, %v1413_v17 }
 0x158   : > { %v642_v1 = vmul.f32 %v1416_v21, %v560_v63  ;;  %v650_v7 = vmul.f32 %v634_v4, %v584_v0 }
 0x159   : > { %v643_v8 = vmul.f32 %v1416_v21, %v562_v5  ;;  %v651_v9 = vmul.f32 %v634_v4, %v586_v6 }
 0x15a   : > { %658 = vst [vmem:[%s1421_s9 + $0x30] sm:$0xff] %v642_v1  ;;  %666 = vst [vmem:[%s1421_s9 + $0x70] sm:$0xff] %v650_v7 }
 0x15b   : > { %659 = vst [vmem:[%s1421_s9 + $0x38] sm:$0xff] %v643_v8  ;;  %667 = vst [vmem:[%s1421_s9 + $0x78] sm:$0xff] %v651_v9 }
 0x15c PF: > { %s17_s20 = sadd.s32 1, %s1085_s20   ;;  %s1473_s15 = smov %s1069_s16 }
 0x15d   : > { %p14_p9 = scmp.ge.s32.totalorder %s17_s20, 4   ;;  %s1474_s16 = smov %s1073_s17 }
 0x15e   : > { %s1475_s17 = smov %s1165_s27  ;;  %s1476_s18 = smov %s1081_s19 }
 0x15f   : > { %s1477_s19 = smov %s1479_s22  ;;  %16 = sbr.rel (!%p14_p9) target bundleno = 4 (0x4), region = 79 }
 0x166   :  { %698 = vsyncpa [#allocation3], 1 }
 0x167   :  { %700 = vsyncpa [#allocation3 + $0x1], 1 }

</bundles_post_ra>
